<compile_context>
chip_gen: v5e
topology: v5e:2x2
jax: 0.10.0
libtpu: 0.0.40
codegen_flags: <defaults>
</compile_context>

<pallas_src>
import math

import jax
import jax.numpy as jnp
from jax import lax
from jax.experimental import pallas as pl
from jax.experimental.pallas import tpu as pltpu


HIDDEN = 512
LN_EPS = 1e-5          # torch.nn.LayerNorm default
TILE_N = 512           # head-output tile: lane-dense, multiple of 256 (v6e/v7x MXU)


# --------------------------------------------------------------------------
# Kernel A: shared MLP  (Linear -> LayerNorm -> GELU), computed once.
# --------------------------------------------------------------------------
def _shared_mlp_kernel(x_ref, w1_ref, b1_ref, gamma_ref, beta_ref, g_ref):
    x = x_ref[...].astype(jnp.float32)

    # Linear(input_dim, 512)
    h = jnp.dot(x, w1_ref[...], preferred_element_type=jnp.float32) + b1_ref[...]

    # LayerNorm(512) over last dim (biased variance, torch default)
    mu = jnp.mean(h, axis=-1, keepdims=True)
    c = h - mu
    var = jnp.mean(c * c, axis=-1, keepdims=True)
    hn = c * lax.rsqrt(var + LN_EPS) * gamma_ref[...] + beta_ref[...]

    # GELU (exact erf form, PyTorch default) -- keep f32 math (no bf16 EUP on v5e)
    g = 0.5 * hn * (1.0 + lax.erf(hn * (1.0 / math.sqrt(2.0))))

    g_ref[...] = g.astype(g_ref.dtype)


def _run_shared_mlp(context, w1, b1, gamma, beta):
    B = context.shape[0]
    full = lambda shape: pl.BlockSpec(shape, lambda: (0,) * len(shape))
    return pl.pallas_call(
        _shared_mlp_kernel,
        out_shape=jax.ShapeDtypeStruct((B, HIDDEN), jnp.bfloat16),
        in_specs=[
            full(context.shape),
            full(w1.shape),
            full(b1.shape),
            full(gamma.shape),
            full(beta.shape),
        ],
        out_specs=full((B, HIDDEN)),
    )(context, w1, b1, gamma, beta)


# --------------------------------------------------------------------------
# Kernel B: fused heads matmul, tiled over the concatenated output dim T.
# --------------------------------------------------------------------------
def _heads_kernel(g_ref, wh_ref, bh_ref, out_ref):
    # g: [B, 512] bf16 (resident across all T tiles), wh: [512, TILE_N] bf16.
    acc = jnp.dot(g_ref[...], wh_ref[...], preferred_element_type=jnp.float32)
    out_ref[...] = (acc + bh_ref[...]).astype(out_ref.dtype)


def _run_heads(g, w_heads, b_heads):
    B = g.shape[0]
    T = w_heads.shape[1]                       # multiple of TILE_N by construction
    grid = (T // TILE_N,)
    cost = pl.CostEstimate(
        flops=2 * B * HIDDEN * T,
        transcendentals=0,
        bytes_accessed=(HIDDEN * T * 2        # bf16 head weights (dominant stream)
                        + T * 4               # f32 head bias
                        + B * HIDDEN * 2      # bf16 shared activation
                        + B * T * 4))         # f32 output writeback
    return pl.pallas_call(
        _heads_kernel,
        out_shape=jax.ShapeDtypeStruct((B, T), jnp.float32),
        grid=grid,
        in_specs=[
            pl.BlockSpec((B, HIDDEN), lambda j: (0, 0)),       # stays resident
            pl.BlockSpec((HIDDEN, TILE_N), lambda j: (0, j)),  # streamed, double-buffered
            pl.BlockSpec((1, TILE_N), lambda j: (0, j)),
        ],
        out_specs=pl.BlockSpec((B, TILE_N), lambda j: (0, j)),
        compiler_params=pltpu.CompilerParams(
            dimension_semantics=("parallel",)),                # v7x: split T over 2 TCs
        cost_estimate=cost,
    )(g, w_heads, b_heads)


# --------------------------------------------------------------------------
# Module wrapper
# --------------------------------------------------------------------------
class HyperNetworkPallas:
    """JAX/Pallas re-implementation of the PyTorch HyperNetwork module."""

    def __init__(self, input_dim, output_shapes, key):
        self.input_dim = input_dim
        self.output_shapes = dict(output_shapes)

        k1, k2, *head_keys = jax.random.split(key, 2 + 2 * len(output_shapes))

        def linear_init(kw, kb, fan_in, fan_out):
            # torch.nn.Linear default: U(-1/sqrt(fan_in), 1/sqrt(fan_in))
            bound = 1.0 / math.sqrt(fan_in)
            w = jax.random.uniform(kw, (fan_in, fan_out), jnp.float32, -bound, bound)
            b = jax.random.uniform(kb, (1, fan_out), jnp.float32, -bound, bound)
            return w, b

        # shared_mlp: Linear(input_dim, 512) + LayerNorm(512) params (f32)
        self.w1, self.b1 = linear_init(k1, k2, input_dim, HIDDEN)
        self.gamma = jnp.ones((1, HIDDEN), jnp.float32)
        self.beta = jnp.zeros((1, HIDDEN), jnp.float32)

        # Per-head Linear(512, prod(shape)) concatenated along the output axis,
        # padded to a multiple of TILE_N with zero columns.
        sizes = {name: int(math.prod(shape)) for name, shape in self.output_shapes.items()}
        total = sum(sizes.values())
        total_padded = max(TILE_N, ((total + TILE_N - 1) // TILE_N) * TILE_N)

        w_heads = jnp.zeros((HIDDEN, total_padded), jnp.float32)
        b_heads = jnp.zeros((1, total_padded), jnp.float32)
        offsets = {}
        off = 0
        for i, (name, shape) in enumerate(self.output_shapes.items()):
            kw, kb = head_keys[2 * i], head_keys[2 * i + 1]
            w, b = linear_init(kw, kb, HIDDEN, sizes[name])
            w_heads = w_heads.at[:, off:off + sizes[name]].set(w)
            b_heads = b_heads.at[:, off:off + sizes[name]].set(b)
            offsets[name] = (off, sizes[name])
            off += sizes[name]

        # Store the big streamed matrix in bf16 (halves HBM traffic; f32 accumulate
        # on the MXU).  Bias stays f32 (added post-accumulation).
        self.w_heads = w_heads.astype(jnp.bfloat16)
        self.b_heads = b_heads
        self.offsets = offsets

    def __call__(self, context):
        # context: [B, input_dim] float32
        g = _run_shared_mlp(context, self.w1, self.b1, self.gamma, self.beta)
        fused = _run_heads(g, self.w_heads, self.b_heads)
        out = {}
        for name, shape in self.output_shapes.items():
            off, size = self.offsets[name]
            out[name] = fused[:, off:off + size].reshape((-1,) + tuple(shape))
        return out


# --------------------------------------------------------------------------
# Pure-JAX reference (same bf16 weight storage / f32 accumulation)
# --------------------------------------------------------------------------
def _reference(context, net):
    h = context @ net.w1 + net.b1
    mu = h.mean(-1, keepdims=True)
    var = ((h - mu) ** 2).mean(-1, keepdims=True)
    hn = (h - mu) / jnp.sqrt(var + LN_EPS) * net.gamma + net.beta
    g = 0.5 * hn * (1.0 + lax.erf(hn / math.sqrt(2.0)))
    g_bf16 = g.astype(jnp.bfloat16)
    fused = jnp.dot(g_bf16, net.w_heads, preferred_element_type=jnp.float32) + net.b_heads
    out = {}
    for name, shape in net.output_shapes.items():
        off, size = net.offsets[name]
        out[name] = fused[:, off:off + size].reshape((-1,) + tuple(shape))
    return out


if __name__ == "__main__":
    key = jax.random.PRNGKey(0)
    k_ctx, k_params = jax.random.split(key)

    batch = 8
    input_dim = 32
    output_shapes = {
        "conv_weight": (4, 4, 3, 3),   # prod = 144
        "conv_bias": (4,),             # prod = 4
    }

    context = jax.random.normal(k_ctx, (batch, input_dim), dtype=jnp.float32)

    net = HyperNetworkPallas(input_dim, output_shapes, k_params)
    outputs = net(context)
    outputs = jax.tree_util.tree_map(jax.block_until_ready, outputs)

    # Correctness check against a pure-JAX reference (same bf16 weight path).
    ref = _reference(context, net)
    for name in output_shapes:
        assert outputs[name].shape == (batch,) + tuple(output_shapes[name])
        assert jnp.allclose(outputs[name], ref[name], atol=1e-2, rtol=1e-2), name

    print("KERNEL_OK")
</pallas_src>

<mosaic_0001>
module attributes {stable_mosaic.version = 11 : i64} {
  func.func @_shared_mlp_kernel(%arg0: memref<8x32xf32, #tpu.memory_space<vmem>>, %arg1: memref<32x512xf32, #tpu.memory_space<vmem>>, %arg2: memref<1x512xf32, #tpu.memory_space<vmem>>, %arg3: memref<1x512xf32, #tpu.memory_space<vmem>>, %arg4: memref<1x512xf32, #tpu.memory_space<vmem>>, %arg5: memref<8x512xbf16, #tpu.memory_space<vmem>>) attributes {dimension_semantics = [], scalar_prefetch = 0 : i64, scratch_operands = 0 : i64, tpu.core_type = #tpu.core_type<tc>} {
    %c0 = arith.constant 0 : index
    %c0_0 = arith.constant 0 : index
    %0 = vector.load %arg0[%c0, %c0_0] : memref<8x32xf32, #tpu.memory_space<vmem>>, vector<8x32xf32>
    %c0_1 = arith.constant 0 : index
    %c0_2 = arith.constant 0 : index
    %1 = vector.load %arg1[%c0_1, %c0_2] : memref<32x512xf32, #tpu.memory_space<vmem>>, vector<32x512xf32>
    %cst = arith.constant dense<0.000000e+00> : vector<8x512xf32>
    %2 = tpu.matmul %0, %1, %cst {dimension_numbers = #tpu.dot_dimension_numbers<[1], [0], [0], [1], [0, 0, 1, 1], [], []>} : vector<8x32xf32>, vector<32x512xf32>, vector<8x512xf32> -> vector<8x512xf32>
    %c0_3 = arith.constant 0 : index
    %c0_4 = arith.constant 0 : index
    %3 = vector.load %arg2[%c0_3, %c0_4] : memref<1x512xf32, #tpu.memory_space<vmem>>, vector<1x512xf32>
    %4 = vector.broadcast %3 : vector<1x512xf32> to vector<8x512xf32>
    %5 = arith.addf %2, %4 : vector<8x512xf32>
    %cst_5 = arith.constant dense<0.000000e+00> : vector<8xf32>
    %6 = vector.multi_reduction <add>, %5, %cst_5 [1] : vector<8x512xf32> to vector<8xf32>
    %7 = vector.shape_cast %6 : vector<8xf32> to vector<8x1xf32>
    %cst_6 = arith.constant 5.120000e+02 : f32
    %8 = vector.broadcast %cst_6 : f32 to vector<8x1xf32>
    %9 = arith.divf %7, %8 : vector<8x1xf32>
    %10 = vector.broadcast %9 : vector<8x1xf32> to vector<8x512xf32>
    %11 = arith.subf %5, %10 : vector<8x512xf32>
    %12 = arith.mulf %11, %11 : vector<8x512xf32>
    %cst_7 = arith.constant dense<0.000000e+00> : vector<8xf32>
    %13 = vector.multi_reduction <add>, %12, %cst_7 [1] : vector<8x512xf32> to vector<8xf32>
    %14 = vector.shape_cast %13 : vector<8xf32> to vector<8x1xf32>
    %cst_8 = arith.constant 5.120000e+02 : f32
    %15 = vector.broadcast %cst_8 : f32 to vector<8x1xf32>
    %16 = arith.divf %14, %15 : vector<8x1xf32>
    %cst_9 = arith.constant 9.99999974E-6 : f32
    %17 = vector.broadcast %cst_9 : f32 to vector<8x1xf32>
    %18 = arith.addf %16, %17 : vector<8x1xf32>
    %19 = math.rsqrt %18 : vector<8x1xf32>
    %20 = vector.broadcast %19 : vector<8x1xf32> to vector<8x512xf32>
    %21 = arith.mulf %11, %20 : vector<8x512xf32>
    %c0_10 = arith.constant 0 : index
    %c0_11 = arith.constant 0 : index
    %22 = vector.load %arg3[%c0_10, %c0_11] : memref<1x512xf32, #tpu.memory_space<vmem>>, vector<1x512xf32>
    %23 = vector.broadcast %22 : vector<1x512xf32> to vector<8x512xf32>
    %24 = arith.mulf %21, %23 : vector<8x512xf32>
    %c0_12 = arith.constant 0 : index
    %c0_13 = arith.constant 0 : index
    %25 = vector.load %arg4[%c0_12, %c0_13] : memref<1x512xf32, #tpu.memory_space<vmem>>, vector<1x512xf32>
    %26 = vector.broadcast %25 : vector<1x512xf32> to vector<8x512xf32>
    %27 = arith.addf %24, %26 : vector<8x512xf32>
    %cst_14 = arith.constant 5.000000e-01 : f32
    %28 = vector.broadcast %cst_14 : f32 to vector<8x512xf32>
    %29 = arith.mulf %28, %27 : vector<8x512xf32>
    %cst_15 = arith.constant 0.707106769 : f32
    %30 = vector.broadcast %cst_15 : f32 to vector<8x512xf32>
    %31 = arith.mulf %27, %30 : vector<8x512xf32>
    %32 = math.erf %31 : vector<8x512xf32>
    %cst_16 = arith.constant 1.000000e+00 : f32
    %33 = vector.broadcast %cst_16 : f32 to vector<8x512xf32>
    %34 = arith.addf %33, %32 : vector<8x512xf32>
    %35 = arith.mulf %29, %34 : vector<8x512xf32>
    %36 = arith.truncf %35 : vector<8x512xf32> to vector<8x512xbf16>
    %c0_17 = arith.constant 0 : index
    %c0_18 = arith.constant 0 : index
    %37 = vector.load %arg5[%c0_17, %c0_18] : memref<8x512xbf16, #tpu.memory_space<vmem>>, vector<8x512xbf16>
    tpu.vector_store %arg5[%c0_17, %c0_18], %36 {strides = array<i32>} : memref<8x512xbf16, #tpu.memory_space<vmem>>, vector<8x512xbf16>,
    return
  }
}

</mosaic_0001>

<bundles_post_ra>
// kernel: tpu_custom_call.1
= control target key start
LH: loop header
LB: loop body
LE: loop exit
PB: predicated region body
PF: predicated region fallthrough
CT: control target
= control target key end

     0   :  { %10 = vsyncpa [#allocation3], 0  ;;  %s815_s0 = inlined_call_operand.hbm [shape: f32[8,32], index: 0, kind: input, shape index: {}]   ;;  %s816_s1 = inlined_call_operand.hbm [shape: f32[32,512], index: 1, kind: input, shape index: {}]   ;;  %s817_s2 = inlined_call_operand.hbm [shape: f32[1,512], index: 2, kind: input, shape index: {}]   ;;  %s818_s3 = inlined_call_operand.hbm [shape: f32[1,512], index: 3, kind: input, shape index: {}]   ;;  %s819_s4 = inlined_call_operand.hbm [shape: f32[1,512], index: 4, kind: input, shape index: {}]   ;;  %s820_s5 = inlined_call_operand.hbm [shape: bf16[8,512], index: 5, kind: output, shape index: {}]  }
   0x1   :  { %11 = vsyncpa [#allocation6], 0 }
   0x2   :  { %12 = vsyncpa [#allocation9], 0  ;;  %s29_s20 = sshll.u32 %s816_s1, 4  ;;  %s30_s20 = int_to_ptr.hbm [resolvable:$true] %s29_s20 }
   0x3   :  { %13 = vsyncpa [#allocation4], 0  ;;  %s652_s21 = smov [#allocation5]   ;;  %s54_s25 = sshll.u32 %s818_s3, 4  ;;  %s55_s25 = int_to_ptr.hbm [resolvable:$true] %s54_s25 }
   0x4   :  { %s31_s22 = sshll.u32 %s652_s21, 4  ;;  %s653_s26 = smov 512   ;;  %s32_s22 = int_to_ptr.vmem [resolvable:$true] %s31_s22 }
   0x5   :  { %s654_s27 = smov 32   ;;  %s655_s28 = smov [#allocation8]  }
   0x6   :  { %37 = dma.hbm_to_vmem [thread:$0]  %s30_s20, 2048, %s32_s22, [#allocation6], %s653_s26, %s653_s26, %s654_s27  }
   0x7   :  { %s56_s29 = sshll.u32 %s655_s28, 4  ;;  %s19_s7 = sshll.u32 %s815_s0, 4  ;;  %s57_s29 = int_to_ptr.vmem [resolvable:$true] %s56_s29  ;;  %s20_s7 = int_to_ptr.hbm [resolvable:$true] %s19_s7 }
   0x8   :  { %59 = dma.hbm_to_vmem [thread:$0]  %s55_s25, 64, %s57_s29, [#allocation9]  }
   0x9   :  { %s43_s9 = sshll.u32 %s817_s2, 4  ;;  %s656_s10 = smov [#allocation2]   ;;  %s44_s9 = int_to_ptr.hbm [resolvable:$true] %s43_s9 }
   0xa   :  { %s21_s11 = sshll.u32 %s656_s10, 4  ;;  %s657_s3 = smov [#allocation7]   ;;  %s22_s11 = int_to_ptr.vmem [resolvable:$true] %s21_s11 }
   0xb   :  { %24 = dma.hbm_to_vmem [thread:$0]  %s20_s7, 128, %s22_s11, [#allocation3]  }
   0xc   :  { %s45_s12 = sshll.u32 %s657_s3, 4  ;;  %s65_s15 = sshll.u32 %s819_s4, 4  ;;  %s46_s12 = int_to_ptr.vmem [resolvable:$true] %s45_s12  ;;  %s66_s15 = int_to_ptr.hbm [resolvable:$true] %s65_s15 }
   0xd   :  { %48 = dma.hbm_to_vmem [thread:$0]  %s44_s9, 64, %s46_s12, [#allocation6]  }
   0xe   :  { %s658_s0 = smov [#allocation10]  }
   0xf   :  { %s67_s16 = sshll.u32 %s658_s0, 4  ;;  %s68_s16 = int_to_ptr.vmem [resolvable:$true] %s67_s16 }
  0x10   :  { %70 = dma.hbm_to_vmem [thread:$0]  %s66_s15, 64, %s68_s16, [#allocation9]  }
  0x11   :  { %644 = dma.done.wait [#allocation3], 128  }
  0x12   :  { %645 = vsyncadd [#allocation3], 4294967168 }
  0x13   :  { %646 = dma.done.wait [#allocation6], 2112  }
  0x14   :  { %647 = vsyncadd [#allocation6], 4294965184 }
  0x15   :  { %648 = dma.done.wait [#allocation9], 128  }
  0x16   :  { %649 = vsyncadd [#allocation9], 4294967168  ;;  %v106_v0 = vld [vmem:[#allocation5 + $0x70] sm:$0xff]  ;;  %v107_v2 = vld [vmem:[#allocation5 + $0x78] sm:$0xff]  ;;  %vm118_vm0 = vcmask 261120   ;;  %v659_v33 = vmov 512.0  }
  0x17   :  { %v102_v1 = vld [vmem:[#allocation5 + $0x50] sm:$0xff]  ;;  %174 = vmatpush.msra.mxu2 %v106_v0  ;;  %194 = vmatpush.msra.mxu3 %v107_v2  ;;  %v104_v3 = vld [vmem:[#allocation5 + $0x60] sm:$0xff]  ;;  %v105_v4 = vld [vmem:[#allocation5 + $0x68] sm:$0xff]  ;;  %488 = vrcp.f32 %v659_v33  ;;  %s660_s2 = smov [#allocation11]   ;;  %s459_s19 = sshll.u32 %s820_s5, 4  ;;  %s460_s19 = int_to_ptr.hbm [resolvable:$true] %s459_s19 }
  0x18   :  { %v98_v5 = vld [vmem:[#allocation5 + $0x30] sm:$0xff]  ;;  %134 = vmatpush.msra.mxu0 %v104_v3  ;;  %154 = vmatpush.msra.mxu1 %v105_v4  ;;  %v103_v6 = vld [vmem:[#allocation5 + $0x58] sm:$0xff]  ;;  %v100_v7 = vld [vmem:[#allocation5 + $0x40] sm:$0xff]  ;;  %s457_s4 = sshll.u32 %s660_s2, 4  ;;  %s458_s4 = int_to_ptr.vmem [resolvable:$true] %s457_s4 }
  0x19   :  { %v101_v8 = vld [vmem:[#allocation5 + $0x48] sm:$0xff]  ;;  %175 = vmatpush.msra.mxu2 %v102_v1  ;;  %195 = vmatpush.msra.mxu3 %v103_v6  ;;  %v94_v9 = vld [vmem:[#allocation5 + $0x10] sm:$0xff]  ;;  %v99_v10 = vld [vmem:[#allocation5 + $0x38] sm:$0xff] }
  0x1a   :  { %135 = vmatpush.msra.mxu0 %v100_v7  ;;  %155 = vmatpush.msra.mxu1 %v101_v8  ;;  %v96_v11 = vld [vmem:[#allocation5 + $0x20] sm:$0xff]  ;;  %v97_v12 = vld [vmem:[#allocation5 + $0x28] sm:$0xff]  ;;  %v95_v13 = vld [vmem:[#allocation5 + $0x18] sm:$0xff] }
  0x1b   :  { %176 = vmatpush.msra.mxu2 %v98_v5  ;;  %196 = vmatpush.msra.mxu3 %v99_v10  ;;  %v91_v14 = vld [vmem:[#allocation2] sm:$0xff]  ;;  %v92_v15 = vld [vmem:[#allocation5] sm:$0xff]  ;;  %v93_v16 = vld [vmem:[#allocation5 + $0x8] sm:$0xff] }
  0x1c   :  { %136 = vmatpush.msra.mxu0 %v96_v11  ;;  %156 = vmatpush.msra.mxu1 %v97_v12  ;;  %v108_v17 = vld [vmem:[#allocation7] sm:$0xf]  ;;  %v244_v60 = vld [vmem:[#allocation8] sm:$0xf]  ;;  %v258_v62 = vld [vmem:[#allocation10] sm:$0xf] }
  0x1d   :  { %177 = vmatpush.msra.mxu2 %v94_v9  ;;  %197 = vmatpush.msra.mxu3 %v95_v13  ;;  %v110_v18 = vperm.slane %v108_v17, 0  ;;  %v111_v19 = vperm.slane %v108_v17, 1  ;;  %v112_v24 = vperm.slane %v108_v17, 2  ;;  %v113_v25 = vperm.slane %v108_v17, 3  ;;  %v489_v34 = vpop.eup %488 }
  0x1e   :  { %473 = vmatmul.msk.f32.vlgmr.msra.gmra.mxu2 %vm118_vm0, %v91_v14  ;;  %474 = vmatmul.msk.f32.vlgmr.msra.gmra.mxu3 %vm118_vm0, %v91_v14  ;;  %v208_v35 = vmul.f32 512.0, %v489_v34  ;;  %vm212_vm1 = vweird.f32 %v489_v34  ;;  %v246_v63 = vperm.slane %v244_v60, 0  ;;  %v247_v1 = vperm.slane %v244_v60, 1 }
  0x1f   :  { %137 = vmatpush.msra.mxu0 %v92_v15  ;;  %157 = vmatpush.msra.mxu1 %v93_v16  ;;  %v248_v2 = vperm.slane %v244_v60, 2  ;;  %v249_v3 = vperm.slane %v244_v60, 3  ;;  %v260_v4 = vperm.slane %v258_v62, 0  ;;  %v261_v6 = vperm.slane %v258_v62, 1 }
  0x20   :  { %471 = vmatmul.msk.f32.vlgmr.msra.gmra.mxu0 %vm118_vm0, %v91_v14  ;;  %472 = vmatmul.msk.f32.vlgmr.msra.gmra.mxu1 %vm118_vm0, %v91_v14  ;;  %v209_v36 = vsub.f32 1.0, %v208_v35  ;;  %v262_v7 = vperm.slane %v258_v62, 2  ;;  %v263_v8 = vperm.slane %v258_v62, 3 }
  0x22   :  { %v210_v37 = vmul.f32 %v489_v34, %v209_v36 }
  0x24   :  { %v211_v38 = vadd.f32 %v489_v34, %v210_v37 }
  0x26   :  { %v213_v39 = vsel %vm212_vm1, %v489_v34, %v211_v38 }
  0x9d   :  { %v139_v20 = vpop.f32.mrf.mxu0  ;;  %v159_v21 = vpop.f32.mrf.mxu1 }
  0x9e   :  { %v140_v22 = vadd.f32 %v139_v20, %v110_v18  ;;  %v160_v23 = vadd.f32 %v159_v21, %v111_v19 }
  0xa0   :  { %v202_v26 = vadd.f32 %v160_v23, %v140_v22 }
  0xa1   :  { %v179_v27 = vpop.f32.mrf.mxu2  ;;  %v199_v28 = vpop.f32.mrf.mxu3 }
  0xa2   :  { %v180_v29 = vadd.f32 %v179_v27, %v112_v24  ;;  %v200_v30 = vadd.f32 %v199_v28, %v113_v25 }
  0xa4   :  { %v203_v31 = vadd.f32 %v202_v26, %v180_v29 }
  0xa6   :  { %v204_v32 = vadd.f32 %v203_v31, %v200_v30 }
  0xa8   :  { %205 = vadd.xlane.f32.xlu0 %v204_v32 }
 0x11b   :  { %v206_v40 = vpop.xlane.xlu0 %205 }
 0x11c   :  { %v214_v41 = vmul.f32 %v213_v39, %v206_v40 }
 0x11e   :  { %v215_v42 = vsub.f32 %v140_v22, %v214_v41  ;;  %v216_v43 = vsub.f32 %v160_v23, %v214_v41  ;;  %v217_v44 = vsub.f32 %v180_v29, %v214_v41  ;;  %v218_v45 = vsub.f32 %v200_v30, %v214_v41 }
 0x120   :  { %v219_v46 = vmul.f32 %v215_v42, %v215_v42  ;;  %v220_v47 = vmul.f32 %v216_v43, %v216_v43  ;;  %v221_v48 = vmul.f32 %v217_v44, %v217_v44  ;;  %v222_v50 = vmul.f32 %v218_v45, %v218_v45 }
 0x122   :  { %v223_v49 = vadd.f32 %v220_v47, %v219_v46 }
 0x124   :  { %v224_v51 = vadd.f32 %v223_v49, %v221_v48 }
 0x126   :  { %v225_v52 = vadd.f32 %v224_v51, %v222_v50 }
 0x128   :  { %226 = vadd.xlane.f32.xlu0 %v225_v52 }
 0x19b   :  { %v227_v53 = vpop.xlane.xlu0 %226 }
 0x19c   :  { %v228_v54 = vmul.f32 %v227_v53, %v213_v39 }
 0x19e   :  { %v229_v55 = vadd.f32 1e-05, %v228_v54 }
 0x1a0   :  { %490 = vrsqrt.f32 %v229_v55  ;;  %vm236_vm3 = vweird.f32 %v229_v55 }
 0x1a6   :  { %v491_v56 = vpop.eup %490 }
 0x1a7   :  { %v231_v57 = vmul.f32 %v491_v56, %v229_v55  ;;  %vm237_vm2 = vweird.f32 %v491_v56 }
 0x1a8   :  { %vm238_vm4 = vmor %vm236_vm3, %vm237_vm2 }
 0x1a9   :  { %v232_v58 = vmul.f32 %v491_v56, %v231_v57 }
 0x1ab   :  { %v233_v59 = vmul.f32 0.5, %v232_v58 }
 0x1ad   :  { %v234_v61 = vsub.f32 1.5, %v233_v59 }
 0x1af   :  { %v235_v0 = vmul.f32 %v491_v56, %v234_v61 }
 0x1b1   :  { %v239_v5 = vsel %vm238_vm4, %v491_v56, %v235_v0 }
 0x1b2   :  { %v240_v9 = vmul.f32 %v239_v5, %v215_v42  ;;  %v241_v10 = vmul.f32 %v239_v5, %v216_v43  ;;  %v242_v11 = vmul.f32 %v239_v5, %v217_v44  ;;  %v243_v12 = vmul.f32 %v239_v5, %v218_v45 }
 0x1b4   :  { %v254_v13 = vmul.f32 %v246_v63, %v240_v9  ;;  %v255_v14 = vmul.f32 %v247_v1, %v241_v10  ;;  %v256_v15 = vmul.f32 %v248_v2, %v242_v11  ;;  %v257_v16 = vmul.f32 %v249_v3, %v243_v12 }
 0x1b6   :  { %v706_v17 = vadd.f32 %v260_v4, %v254_v13  ;;  %v708_v18 = vadd.f32 %v261_v6, %v255_v14  ;;  %v710_v19 = vadd.f32 %v262_v7, %v256_v15  ;;  %v712_v20 = vadd.f32 %v263_v8, %v257_v16 }
 0x1b8   :  { %v715_v21 = vmul.f32 0.70710677, %v706_v17  ;;  %v718_v22 = vmul.f32 0.70710677, %v708_v18  ;;  %v721_v23 = vmul.f32 0.70710677, %v710_v19 }
 0x1b9   :  { %v724_v24 = vmul.f32 0.70710677, %v712_v20 }
 0x1ba   :  { %v280_v25 = vmul.f32 %v715_v21, %v715_v21  ;;  %v320_v26 = vmul.f32 %v718_v22, %v718_v22  ;;  %v360_v27 = vmul.f32 %v721_v23, %v721_v23 }
 0x1bb   :  { %v400_v28 = vmul.f32 %v724_v24, %v724_v24 }
 0x1bc   :  { %v734_v29 = vmin.f32 %v280_v25, 16.0  ;;  %v736_v30 = vmin.f32 %v320_v26, 16.0  ;;  %v738_v31 = vmin.f32 %v360_v27, 16.0 }
 0x1bd   :  { %v740_v32 = vmin.f32 %v400_v28, 16.0 }
 0x1be   :  { %v282_v33 = vmul.f32 2.1237322e-06, %v734_v29  ;;  %v293_v34 = vmul.f32 3.8918573e-05, %v734_v29  ;;  %v322_v35 = vmul.f32 2.1237322e-06, %v736_v30 }
 0x1bf   :  { %v333_v36 = vmul.f32 3.8918573e-05, %v736_v30  ;;  %v362_v37 = vmul.f32 2.1237322e-06, %v738_v31  ;;  %v373_v38 = vmul.f32 3.8918573e-05, %v738_v31 }
 0x1c0   :  { %v283_v39 = vadd.f32 0.00028619796, %v282_v33  ;;  %v294_v40 = vadd.f32 0.001143296, %v293_v34  ;;  %v323_v41 = vadd.f32 0.00028619796, %v322_v35 }
 0x1c1   :  { %v334_v42 = vadd.f32 0.001143296, %v333_v36  ;;  %v363_v43 = vadd.f32 0.00028619796, %v362_v37  ;;  %v374_v44 = vadd.f32 0.001143296, %v373_v38 }
 0x1c2   :  { %v284_v45 = vmul.f32 %v283_v39, %v734_v29  ;;  %v295_v46 = vmul.f32 %v294_v40, %v734_v29  ;;  %v324_v47 = vmul.f32 %v323_v41, %v736_v30  ;;  %v402_v48 = vmul.f32 2.1237322e-06, %v740_v32 }
 0x1c3   :  { %v335_v49 = vmul.f32 %v334_v42, %v736_v30  ;;  %v364_v50 = vmul.f32 %v363_v43, %v738_v31  ;;  %v375_v51 = vmul.f32 %v374_v44, %v738_v31  ;;  %v413_v52 = vmul.f32 3.8918573e-05, %v740_v32 }
 0x1c4   :  { %v285_v53 = vadd.f32 0.0036580483, %v284_v45  ;;  %v296_v54 = vadd.f32 0.014752088, %v295_v46  ;;  %v325_v55 = vadd.f32 0.0036580483, %v324_v47 }
 0x1c5   :  { %v336_v56 = vadd.f32 0.014752088, %v335_v49  ;;  %v365_v57 = vadd.f32 0.0036580483, %v364_v50  ;;  %v376_v58 = vadd.f32 0.014752088, %v375_v51 }
 0x1c6   :  { %v286_v59 = vmul.f32 %v285_v53, %v734_v29  ;;  %v297_v60 = vmul.f32 %v296_v54, %v734_v29  ;;  %v326_v61 = vmul.f32 %v325_v55, %v736_v30  ;;  %v403_v62 = vadd.f32 0.00028619796, %v402_v48 }
 0x1c7   :  { %v337_v63 = vmul.f32 %v336_v56, %v736_v30  ;;  %v366_v0 = vmul.f32 %v365_v57, %v738_v31  ;;  %v377_v1 = vmul.f32 %v376_v58, %v738_v31  ;;  %v414_v2 = vadd.f32 0.001143296, %v413_v52 }
 0x1c8   :  { %v287_v3 = vadd.f32 0.05243302, %v286_v59  ;;  %v298_v4 = vadd.f32 0.112945676, %v297_v60  ;;  %v327_v5 = vadd.f32 0.05243302, %v326_v61  ;;  %v404_v8 = vmul.f32 %v403_v62, %v740_v32 }
 0x1c9   :  { %v338_v6 = vadd.f32 0.112945676, %v337_v63  ;;  %v378_v7 = vadd.f32 0.112945676, %v377_v1  ;;  %v415_v9 = vmul.f32 %v414_v2, %v740_v32  ;;  %v367_v12 = vadd.f32 0.05243302, %v366_v0 }
 0x1ca   :  { %v288_v10 = vmul.f32 %v287_v3, %v734_v29  ;;  %v299_v11 = vmul.f32 %v298_v4, %v734_v29  ;;  %v328_v13 = vmul.f32 %v327_v5, %v736_v30  ;;  %v405_v28 = vadd.f32 0.0036580483, %v404_v8 }
 0x1cb   :  { %v339_v14 = vmul.f32 %v338_v6, %v736_v30  ;;  %v379_v15 = vmul.f32 %v378_v7, %v738_v31  ;;  %v416_v16 = vadd.f32 0.014752088, %v415_v9  ;;  %v368_v36 = vmul.f32 %v367_v12, %v738_v31 }
 0x1cc   :  { %v300_v25 = vadd.f32 0.4994258, %v299_v11  ;;  %v289_v34 = vadd.f32 0.18741608, %v288_v10  ;;  %v329_v37 = vadd.f32 0.18741608, %v328_v13  ;;  %v406_v44 = vmul.f32 %v405_v28, %v740_v32 }
 0x1cd   :  { %v340_v26 = vadd.f32 0.4994258, %v339_v14  ;;  %v380_v27 = vadd.f32 0.4994258, %v379_v15  ;;  %v417_v33 = vmul.f32 %v416_v16, %v740_v32  ;;  %v369_v46 = vadd.f32 0.18741608, %v368_v36 }
 0x1ce   :  { %v301_v35 = vmul.f32 %v300_v25, %v734_v29  ;;  %v290_v45 = vmul.f32 %v289_v34, %v734_v29  ;;  %v330_v47 = vmul.f32 %v329_v37, %v736_v30  ;;  %v407_v49 = vadd.f32 0.05243302, %v406_v44 }
 0x1cf   :  { %v341_v38 = vmul.f32 %v340_v26, %v736_v30  ;;  %v381_v39 = vmul.f32 %v380_v27, %v738_v31  ;;  %v418_v40 = vadd.f32 0.112945676, %v417_v33  ;;  %v370_v51 = vmul.f32 %v369_v46, %v738_v31 }
 0x1d0   :  { %v302_v41 = vadd.f32 1.0, %v301_v35  ;;  %v291_v50 = vadd.f32 1.1283791, %v290_v45  ;;  %v331_v52 = vadd.f32 1.1283791, %v330_v47  ;;  %v408_v29 = vmul.f32 %v407_v49, %v740_v32 }
 0x1d1   :  { %v342_v42 = vadd.f32 1.0, %v341_v38  ;;  %v774_v43 = vadd.f32 1.0, %v381_v39  ;;  %v419_v48 = vmul.f32 %v418_v40, %v740_v32  ;;  %v371_v60 = vadd.f32 1.1283791, %v370_v51 }
 0x1d2   :  { %492 = vrcp.f32 %v302_v41  ;;  %v312_v55 = vand.u32 2147483647, %v302_v41  ;;  %v292_v30 = vmul.f32 %v291_v50, %v715_v21  ;;  %vm308_vm5 = vweird.f32 %v302_v41 }
 0x1d3   :  { %494 = vrcp.f32 %v342_v42  ;;  %v420_v53 = vadd.f32 0.4994258, %v419_v48  ;;  %v314_v63 = vand.u32 2147483648, %v302_v41  ;;  %v332_v31 = vmul.f32 %v331_v52, %v718_v22 }
 0x1d4   :  { %496 = vrcp.f32 %v774_v43  ;;  %vm788_vm6 = vcmp.eq.f32.partialorder %v312_v55, 8.507059e+37  ;;  %vm348_vm7 = vweird.f32 %v342_v42  ;;  %v354_v21 = vand.u32 2147483648, %v342_v42 }
 0x1d5   :  { %v421_v58 = vmul.f32 %v420_v53, %v740_v32  ;;  %v352_v6 = vand.u32 2147483647, %v342_v42  ;;  %v315_v8 = vor.u32 1.1754944e-38, %v314_v63  ;;  %v394_v9 = vand.u32 2147483648, %v774_v43 }
 0x1d6   :  { %v409_v10 = vadd.f32 0.18741608, %v408_v29  ;;  %v392_v13 = vand.u32 2147483647, %v774_v43  ;;  %v355_v15 = vor.u32 1.1754944e-38, %v354_v21  ;;  %v372_v16 = vmul.f32 %v371_v60, %v721_v23 }
 0x1d7   :  { %v786_v0 = vadd.f32 1.0, %v421_v58  ;;  %vm388_vm13 = vweird.f32 %v774_v43  ;;  %vm353_vm14 = vcmp.eq.f32.partialorder %v352_v6, 8.507059e+37  ;;  %v395_v35 = vor.u32 1.1754944e-38, %v394_v9 }
 0x1d8   :  { %v493_v54 = vpop.eup %492  ;;  %v410_v36 = vmul.f32 %v409_v10, %v740_v32  ;;  %vm393_vm0 = vcmp.eq.f32.partialorder %v392_v13, 8.507059e+37  ;;  %v273_v45 = vmul.f32 0.5, %v708_v18  ;;  %v275_v60 = vmul.f32 0.5, %v712_v20 }
 0x1d9   :  { %v495_v56 = vpop.eup %494  ;;  %v304_v57 = vmul.f32 %v493_v54, %v302_v41  ;;  %vm309_vm8 = vweird.f32 %v493_v54  ;;  %498 = vrcp.f32 %v786_v0  ;;  %v272_v41 = vmul.f32 0.5, %v706_v17 }
 0x1da   :  { %v344_v59 = vmul.f32 %v495_v56, %v342_v42  ;;  %v497_v61 = vpop.eup %496  ;;  %vm349_vm9 = vweird.f32 %v495_v56  ;;  %vm310_vm10 = vmor %vm308_vm5, %vm309_vm8  ;;  %v411_v46 = vadd.f32 1.1283791, %v410_v36  ;;  %v434_v47 = vand.u32 2147483648, %v786_v0 }
 0x1db   :  { %v305_v62 = vsub.f32 1.0, %v304_v57  ;;  %v384_v3 = vmul.f32 %v497_v61, %v774_v43  ;;  %vm389_vm11 = vweird.f32 %v497_v61  ;;  %vm350_vm12 = vmor %vm348_vm7, %vm349_vm9  ;;  %v432_v32 = vand.u32 2147483647, %v786_v0 }
 0x1dc   :  { %v345_v2 = vsub.f32 1.0, %v344_v59  ;;  %vm390_vm15 = vmor %vm388_vm13, %vm389_vm11  ;;  %vm428_vm2 = vweird.f32 %v786_v0  ;;  %v412_v55 = vmul.f32 %v411_v46, %v724_v24 }
 0x1dd   :  { %v306_v4 = vmul.f32 %v493_v54, %v305_v62  ;;  %v385_v7 = vsub.f32 1.0, %v384_v3  ;;  %vm433_vm4 = vcmp.eq.f32.partialorder %v432_v32, 8.507059e+37 }
 0x1de   :  { %v346_v5 = vmul.f32 %v495_v56, %v345_v2 }
 0x1df   :  { %v307_v22 = vadd.f32 %v493_v54, %v306_v4  ;;  %v386_v12 = vmul.f32 %v497_v61, %v385_v7  ;;  %v499_v28 = vpop.eup %498 }
 0x1e0   :  { %v347_v11 = vadd.f32 %v495_v56, %v346_v5  ;;  %v424_v23 = vmul.f32 %v499_v28, %v786_v0  ;;  %vm429_vm1 = vweird.f32 %v499_v28 }
 0x1e1   :  { %v311_v14 = vsel %vm310_vm10, %v493_v54, %v307_v22  ;;  %v387_v27 = vadd.f32 %v497_v61, %v386_v12  ;;  %vm430_vm3 = vmor %vm428_vm2, %vm429_vm1  ;;  %v435_v54 = vor.u32 1.1754944e-38, %v434_v47 }
 0x1e2   :  { %v316_v25 = vsel %vm788_vm6, %v315_v8, %v311_v14  ;;  %v351_v26 = vsel %vm350_vm12, %v495_v56, %v347_v11  ;;  %v425_v44 = vsub.f32 1.0, %v424_v23 }
 0x1e3   :  { %v317_v33 = vmul.f32 %v316_v25, %v292_v30  ;;  %v356_v34 = vsel %vm353_vm14, %v355_v15, %v351_v26  ;;  %v391_v38 = vsel %vm390_vm15, %v497_v61, %v387_v27  ;;  %v274_v30 = vmul.f32 0.5, %v710_v19 }
 0x1e4   :  { %v357_v37 = vmul.f32 %v356_v34, %v332_v31  ;;  %v396_v40 = vsel %vm393_vm0, %v395_v35, %v391_v38  ;;  %v426_v49 = vmul.f32 %v499_v28, %v425_v44 }
 0x1e5   :  { %v475_v39 = vclamps-f32 %v317_v33, 1.0  ;;  %v397_v43 = vmul.f32 %v396_v40, %v372_v16 }
 0x1e6   :  { %v476_v42 = vclamps-f32 %v357_v37, 1.0  ;;  %v427_v53 = vadd.f32 %v499_v28, %v426_v49 }
 0x1e7   :  { %v440_v48 = vadd.f32 1.0, %v475_v39  ;;  %v477_v52 = vclamps-f32 %v397_v43, 1.0 }
 0x1e8   :  { %v441_v50 = vadd.f32 1.0, %v476_v42  ;;  %v431_v18 = vsel %vm430_vm3, %v499_v28, %v427_v53 }
 0x1e9   :  { %v444_v51 = vmul.f32 %v440_v48, %v272_v41  ;;  %v436_v57 = vsel %vm433_vm4, %v435_v54, %v431_v18  ;;  %v442_v58 = vadd.f32 1.0, %v477_v52 }
 0x1ea   :  { %v445_v17 = vmul.f32 %v441_v50, %v273_v45  ;;  %v437_v29 = vmul.f32 %v436_v57, %v412_v55 }
 0x1eb   :  { %v446_v62 = vmul.f32 %v442_v58, %v274_v30 }
 0x1ec   :  { %v448_v56 = vpack.c.bf16 %v445_v17, %v444_v51  ;;  %v478_v59 = vclamps-f32 %v437_v29, 1.0 }
 0x1ee   :  { %450 = vst [vmem:[#allocation11] sm:$0xff] %v448_v56  ;;  %v443_v61 = vadd.f32 1.0, %v478_v59 }
 0x1f0   :  { %v447_v24 = vmul.f32 %v443_v61, %v275_v60 }
 0x1f2   :  { %v449_v63 = vpack.c.bf16 %v447_v24, %v446_v62 }
 0x1f4   :  { %451 = vst [vmem:[#allocation11 + $0x8] sm:$0xff] %v449_v63 }
 0x1f5   :  { %462 = dma.vmem_to_hbm [thread:$0]  %s458_s4, 256, %s460_s19, [#allocation4]  }
 0x1f6   :  { %650 = dma.done.wait [#allocation4], 256  }
 0x1f7   :  { %651 = vsyncadd [#allocation4], 4294967040 }
 0x1f8   :  { %467 = vsyncpa [#allocation3], 1 }
 0x1f9   :  { %468 = vsyncpa [#allocation6], 1 }
 0x1fa   :  { %469 = vsyncpa [#allocation9], 1 }
 0x1fb   :  { %470 = vsyncpa [#allocation4], 1 }

</bundles_post_ra>
